<compile_context>
chip_gen: v5e
topology: v5e:2x2
jax: 0.10.0
libtpu: 0.0.40
codegen_flags: <defaults>
</compile_context>

<pallas_src>
import jax
import jax.numpy as jnp
from jax.experimental import pallas as pl
from jax.experimental.pallas import tpu as pltpu


# --------------------------- cls_net kernel (edge MLP) ---------------------------

def _cls_kernel(ea_ref, w1_ref, b1_ref, w2_ref, b2_ref, dec_ref):
    # Linear(edge_dim->hidden) + ReLU with E in lanes, then the hidden->1 layer
    # as a broadcast-multiply + sublane reduction (an M=1 matmul would waste
    # the systolic array while the flow kernel needs the MXU).
    h = jnp.dot(w1_ref[...], ea_ref[...],
                preferred_element_type=jnp.float32) + b1_ref[...]
    h = jnp.maximum(h, 0.0)                                            # [hidden, tE]
    d = jnp.sum(w2_ref[...] * h, axis=0, keepdims=True) + b2_ref[...]  # [1, tE]
    dec_ref[...] = d


# ----------------------- fused flows + node-model kernel -----------------------

def _flow_node_kernel(d_ref, row_ref, col_ref, x_ref, kx_ref, ki_ref, ko_ref,
                      nb_ref, out_ref, m_ref, l_ref, acc_ref):
    f32, bf16 = jnp.float32, jnp.bfloat16
    NEG = -1e30

    i = pl.program_id(0)                 # N-tile ("parallel")
    e = pl.program_id(1)                 # E-tile ("arbitrary", reduction axis)
    tN, F = out_ref.shape
    N = x_ref.shape[0]
    tE = row_ref.shape[1]

    @pl.when(e == 0)
    def _init():
        m_ref[...] = jnp.full(m_ref.shape, NEG, m_ref.dtype)
        l_ref[...] = jnp.zeros(l_ref.shape, l_ref.dtype)
        acc_ref[...] = jnp.zeros(acc_ref.shape, acc_ref.dtype)

    d = d_ref[...]                        # [1, tE] edge scores (f32)
    rowv = row_ref[...]                   # [1, tE] int32
    colv = col_ref[...]

    # Row one-hot for this N-tile; direction split stays [1, tE].
    local_ids = i * tN + jax.lax.broadcasted_iota(jnp.int32, (tN, tE), 0)
    a_row = (local_ids == rowv).astype(f32)                            # [tN, tE]
    dir_out = (rowv < colv).astype(f32)                                # [1, tE]
    dir_in = (rowv > colv).astype(f32)
    # (out, in) stacked along rows so both directions share the matmuls.
    mask2 = jnp.concatenate([a_row * dir_out, a_row * dir_in], axis=0)  # [2tN, tE]

    # ---- online scatter-softmax: per-row, per-direction running max / denom ----
    scores = jnp.where(mask2 > 0.0, d, NEG)                            # [2tN, tE]
    m_old = m_ref[...]
    m_new = jnp.maximum(m_old, jnp.max(scores, axis=1, keepdims=True))  # [2tN, 1]
    alpha = jnp.exp(m_old - m_new)                                      # [2tN, 1]
    # min(..., 0) keeps masked lanes finite; the mask zeroes them afterwards.
    p = mask2 * jnp.exp(jnp.minimum(d - m_new, 0.0))                    # [2tN, tE]
    l_ref[...] = alpha * l_ref[...] + jnp.sum(p, axis=1, keepdims=True)
    m_ref[...] = m_new

    # ---- unnormalized flows, reassociated: S = p @ g^T, delta = S @ x ----
    # TODO(synk): when N > F, switch back to the gather form (p @ x[col]) with a
    # scalar-prefetched col driving a DMA gather of a [tE, F] x slab per E-tile.
    all_ids = jax.lax.broadcasted_iota(jnp.int32, (N, tE), 0)
    g = (all_ids == colv).astype(f32)                                   # [N, tE]
    contract_e = (((1,), (1,)), ((), ()))
    s_un = jax.lax.dot_general(p.astype(bf16), g.astype(bf16), contract_e,
                               preferred_element_type=f32)              # [2tN, N]
    # TODO(synk): on v7x, s_un/g could be fp8 (g is an exact 0/1 one-hot).
    delta = jnp.dot(s_un.astype(bf16), x_ref[...],
                    preferred_element_type=f32)                         # [2tN, F]
    acc_ref[...] = alpha * acc_ref[...] + delta

    # ---- finalize: deferred normalization + 1x1 Conv(3C->C) + ReLU ----
    @pl.when(e == pl.num_programs(1) - 1)
    def _finalize():
        denom = l_ref[...]
        inv = pl.reciprocal(jnp.where(denom > 0.0, denom, 1.0), approx=True)
        flow2 = (acc_ref[...] * inv).astype(bf16)                       # [2tN, F]
        flow_out, flow_in = flow2[:tN], flow2[tN:]
        x_tile = x_ref[pl.ds(pl.multiple_of(i * tN, tN), tN), :]        # [tN, F] bf16
        y = (jnp.dot(x_tile, kx_ref[...], preferred_element_type=f32)
             + jnp.dot(flow_in, ki_ref[...], preferred_element_type=f32)
             + jnp.dot(flow_out, ko_ref[...], preferred_element_type=f32)
             + nb_ref[...])
        out_ref[...] = jnp.maximum(y, 0.0)                              # [tN, F]


# --------------------------------- Wrapper ---------------------------------

def time_aware_attention_forward(x, edge_index, edge_attr, params,
                                 *, tile_n=8, tile_e=128):
    N, C, H, W = x.shape
    F = C * H * W
    E, edge_dim = edge_attr.shape
    hidden = params["cls_w1"].shape[1]
    assert N % tile_n == 0 and E % tile_e == 0 and F % 128 == 0

    row = edge_index[0].astype(jnp.int32).reshape(1, E)
    col = edge_index[1].astype(jnp.int32).reshape(1, E)
    ea_t = edge_attr.astype(jnp.float32).T                      # [edge_dim, E]
    w1_t = params["cls_w1"].T                                   # [hidden, edge_dim]
    b1 = params["cls_b1"].reshape(-1, 1)                        # [hidden, 1]
    w2_v = params["cls_w2"].reshape(-1, 1)                      # [hidden, 1]
    b2 = params["cls_b2"].reshape(1, 1)

    n_e = E // tile_e

    # --- cls_net over E-tiles (dec written exactly once per edge tile) ---
    dec_row = pl.pallas_call(
        _cls_kernel,
        out_shape=jax.ShapeDtypeStruct((1, E), jnp.float32),
        grid=(n_e,),
        in_specs=[pl.BlockSpec((edge_dim, tile_e), lambda e: (0, e)),
                  pl.BlockSpec((hidden, edge_dim), lambda e: (0, 0)),
                  pl.BlockSpec((hidden, 1), lambda e: (0, 0)),
                  pl.BlockSpec((hidden, 1), lambda e: (0, 0)),
                  pl.BlockSpec((1, 1), lambda e: (0, 0))],
        out_specs=pl.BlockSpec((1, tile_e), lambda e: (0, e)),
        compiler_params=pltpu.CompilerParams(dimension_semantics=("parallel",)),
    )(ea_t, w1_t, b1, w2_v, b2)

    # --- flows + node model on grid (N-tiles parallel, E-tiles arbitrary) ---
    x_bf = x.reshape(N, F).astype(jnp.bfloat16)                 # NCHW-flat, pure reshape
    n_n = N // tile_n
    # TODO(synk): scalar-prefetch row/col (PrefetchScalarGridSpec) with edges
    # sorted by row and pl.when-skip (N-tile, E-tile) pairs that cannot overlap.
    out_flat = pl.pallas_call(
        _flow_node_kernel,
        out_shape=jax.ShapeDtypeStruct((N, F), jnp.float32),
        grid=(n_n, n_e),
        in_specs=[pl.BlockSpec((1, tile_e), lambda i, e: (0, e)),       # d scores
                  pl.BlockSpec((1, tile_e), lambda i, e: (0, e)),       # row
                  pl.BlockSpec((1, tile_e), lambda i, e: (0, e)),       # col
                  pl.BlockSpec((N, F), lambda i, e: (0, 0)),            # x (resident)
                  pl.BlockSpec((F, F), lambda i, e: (0, 0)),            # kx
                  pl.BlockSpec((F, F), lambda i, e: (0, 0)),            # ki
                  pl.BlockSpec((F, F), lambda i, e: (0, 0)),            # ko
                  pl.BlockSpec((1, F), lambda i, e: (0, 0))],           # bias
        out_specs=pl.BlockSpec((tile_n, F), lambda i, e: (i, 0)),
        scratch_shapes=[pltpu.VMEM((2 * tile_n, 1), jnp.float32),       # running max
                        pltpu.VMEM((2 * tile_n, 1), jnp.float32),       # running denom
                        pltpu.VMEM((2 * tile_n, F), jnp.float32)],      # flow accum
        # TODO(synk): re-derive tile_n/tile_e and this limit per generation
        # (v7x: 64 MiB physical VMEM; v6e can go much larger for deeper
        # buffering).  32 MiB is safe on v5e/v6e/v7x.
        compiler_params=pltpu.CompilerParams(
            dimension_semantics=("parallel", "arbitrary"),
            vmem_limit_bytes=32 * 1024 * 1024),
    )(dec_row, row, col, x_bf, params["node_kx"], params["node_ki"],
      params["node_ko"], params["node_b_flat"])

    out = out_flat.reshape(N, C, H, W)                          # free reshape
    dec_edge_feats = dec_row.reshape(E, 1)
    return out, dec_edge_feats


# ------------------------- Params & pure-JAX reference -------------------------

def init_params(key, edge_dim, cls_hidden, C, H, W):
    ks = jax.random.split(key, 6)
    p = {
        "cls_w1": 0.1 * jax.random.normal(ks[0], (edge_dim, cls_hidden), jnp.float32),
        "cls_b1": 0.1 * jax.random.normal(ks[1], (1, cls_hidden), jnp.float32),
        "cls_w2": 0.1 * jax.random.normal(ks[2], (cls_hidden, 1), jnp.float32),
        "cls_b2": 0.1 * jax.random.normal(ks[3], (1, 1), jnp.float32),
        "node_w": 0.1 * jax.random.normal(ks[4], (3 * C, C), jnp.float32),  # Conv2d(3C,C,1).weight.T
        "node_b": 0.1 * jax.random.normal(ks[5], (1, C), jnp.float32),
    }
    # 1x1 Conv(3C->C) folded ONCE as kron(W_block, I_HW) for the NCHW-flat node
    # layout.  TODO(synk): for C >= ~128 switch to NHWC-flat + raw [3C, C]
    # blocks instead (kron inflates weight bytes by HW^2 and FLOPs by HW).
    hw = H * W
    eye = jnp.eye(hw, dtype=jnp.float32)
    nw = p["node_w"]
    p["node_kx"] = jnp.kron(nw[0:C], eye).astype(jnp.bfloat16)
    p["node_ki"] = jnp.kron(nw[C:2 * C], eye).astype(jnp.bfloat16)
    p["node_ko"] = jnp.kron(nw[2 * C:3 * C], eye).astype(jnp.bfloat16)
    p["node_b_flat"] = jnp.kron(p["node_b"], jnp.ones((1, hw), jnp.float32))
    return p


def reference_forward(x, edge_index, edge_attr, params):
    # Pure-JAX reference with torch-like scatter semantics (for validation).
    N, C, H, W = x.shape
    row, col = edge_index[0], edge_index[1]
    h = jnp.maximum(edge_attr @ params["cls_w1"] + params["cls_b1"], 0.0)
    d = h @ params["cls_w2"] + params["cls_b2"]          # [E, 1]
    d0 = d[:, 0]
    x_flat = x.reshape(N, -1)

    def flow(mask):
        dm = jnp.where(mask, d0, -1e30)
        seg_max = jax.ops.segment_max(dm, row, num_segments=N)
        w = jnp.where(mask, jnp.exp(dm - seg_max[row]), 0.0)
        denom = jax.ops.segment_sum(w, row, num_segments=N)
        denom_safe = jnp.where(denom > 0.0, denom, 1.0)
        weights = w / denom_safe[row]
        contrib = x_flat[col] * weights[:, None]
        return jax.ops.segment_sum(contrib, row, num_segments=N).reshape(N, C, H, W)

    flow_out = flow(row < col)
    flow_in = flow(row > col)
    fl = jnp.concatenate((x, flow_in, flow_out), axis=1)
    fl2d = fl.transpose(0, 2, 3, 1).reshape(-1, 3 * C)
    out2d = jnp.maximum(fl2d @ params["node_w"] + params["node_b"], 0.0)
    return out2d.reshape(N, H, W, C).transpose(0, 3, 1, 2), d


# ----------------------------------- Main -----------------------------------

if __name__ == "__main__":
    key = jax.random.PRNGKey(0)
    N, C, H, W = 16, 8, 4, 4          # F = C*H*W = 128 (lane-dense node slab)
    edge_dim, cls_hidden = 6, 16
    E = 256                           # two E-tiles of 128
    tile_n, tile_e = 8, 128

    k_x, k_e, k_attr, k_p = jax.random.split(key, 4)
    x = jax.random.normal(k_x, (N, C, H, W), jnp.float32)

    # deterministic graph: 128 forward pairs + reverses (no self loops), E = 256
    half = E // 2
    src = jax.random.randint(k_e, (half,), 0, N)
    off = jax.random.randint(jax.random.fold_in(k_e, 1), (half,), 0, N - 1)
    dst = (src + 1 + off) % N
    row = jnp.concatenate([src, dst])
    col = jnp.concatenate([dst, src])
    edge_index = jnp.stack([row, col]).astype(jnp.int32)        # [2, E]
    edge_attr = jax.random.normal(k_attr, (E, edge_dim), jnp.float32)

    params = init_params(k_p, edge_dim, cls_hidden, C, H, W)

    out, dec = time_aware_attention_forward(x, edge_index, edge_attr, params,
                                            tile_n=tile_n, tile_e=tile_e)
    out = jax.block_until_ready(out)
    dec = jax.block_until_ready(dec)

    ref_out, ref_dec = reference_forward(x, edge_index, edge_attr, params)
    # dec path is f32 end-to-end; node path uses bf16 MXU operands (f32 acc)
    # plus an approximate reciprocal for the deferred softmax normalization.
    assert jnp.allclose(dec, ref_dec, atol=1e-3, rtol=1e-3), "dec_edge_feats mismatch"
    assert jnp.allclose(out, ref_out, atol=3e-2, rtol=3e-2), "node output mismatch"
    print("KERNEL_OK")
</pallas_src>

<mosaic_0001>
module attributes {stable_mosaic.version = 11 : i64} {
  func.func @_cls_kernel(%arg0: i32, %arg1: memref<6x128xf32, #tpu.memory_space<vmem>>, %arg2: memref<16x6xf32, #tpu.memory_space<vmem>>, %arg3: memref<16x1xf32, #tpu.memory_space<vmem>>, %arg4: memref<16x1xf32, #tpu.memory_space<vmem>>, %arg5: memref<1x1xf32, #tpu.memory_space<vmem>>, %arg6: memref<1x128xf32, #tpu.memory_space<vmem>>) attributes {dimension_semantics = [#tpu.dimension_semantics<parallel>], iteration_bounds = array<i64: 2>, scalar_prefetch = 0 : i64, scratch_operands = 0 : i64, tpu.core_type = #tpu.core_type<tc>, window_params = [{transform_indices = @transform_0, window_bounds = array<i64: 6, 128>}, {pipeline_mode = #tpu.pipeline_mode<synchronous>, transform_indices = @transform_1, window_bounds = array<i64: 16, 6>}, {pipeline_mode = #tpu.pipeline_mode<synchronous>, transform_indices = @transform_2, window_bounds = array<i64: 16, 1>}, {pipeline_mode = #tpu.pipeline_mode<synchronous>, transform_indices = @transform_3, window_bounds = array<i64: 16, 1>}, {pipeline_mode = #tpu.pipeline_mode<synchronous>, transform_indices = @transform_4, window_bounds = array<i64: 1, 1>}, {transform_indices = @transform_5, window_bounds = array<i64: 1, 128>}]} {
    %c0 = arith.constant 0 : index
    %c0_0 = arith.constant 0 : index
    %0 = vector.load %arg2[%c0, %c0_0] : memref<16x6xf32, #tpu.memory_space<vmem>>, vector<16x6xf32>
    %c0_1 = arith.constant 0 : index
    %c0_2 = arith.constant 0 : index
    %1 = vector.load %arg1[%c0_1, %c0_2] : memref<6x128xf32, #tpu.memory_space<vmem>>, vector<6x128xf32>
    %cst = arith.constant dense<0.000000e+00> : vector<16x128xf32>
    %2 = tpu.matmul %0, %1, %cst {dimension_numbers = #tpu.dot_dimension_numbers<[1], [0], [0], [1], [0, 0, 1, 1], [], []>} : vector<16x6xf32>, vector<6x128xf32>, vector<16x128xf32> -> vector<16x128xf32>
    %c0_3 = arith.constant 0 : index
    %c0_4 = arith.constant 0 : index
    %3 = vector.load %arg3[%c0_3, %c0_4] : memref<16x1xf32, #tpu.memory_space<vmem>>, vector<16x1xf32>
    %4 = vector.broadcast %3 : vector<16x1xf32> to vector<16x128xf32>
    %5 = arith.addf %2, %4 : vector<16x128xf32>
    %cst_5 = arith.constant 0.000000e+00 : f32
    %6 = vector.broadcast %cst_5 : f32 to vector<16x128xf32>
    %7 = arith.maximumf %5, %6 : vector<16x128xf32>
    %c0_6 = arith.constant 0 : index
    %c0_7 = arith.constant 0 : index
    %8 = vector.load %arg4[%c0_6, %c0_7] : memref<16x1xf32, #tpu.memory_space<vmem>>, vector<16x1xf32>
    %9 = vector.broadcast %8 : vector<16x1xf32> to vector<16x128xf32>
    %10 = arith.mulf %9, %7 : vector<16x128xf32>
    %cst_8 = arith.constant dense<0.000000e+00> : vector<128xf32>
    %11 = vector.multi_reduction <add>, %10, %cst_8 [0] : vector<16x128xf32> to vector<128xf32>
    %12 = vector.shape_cast %11 : vector<128xf32> to vector<1x128xf32>
    %c0_9 = arith.constant 0 : index
    %c0_10 = arith.constant 0 : index
    %13 = vector.load %arg5[%c0_9, %c0_10] : memref<1x1xf32, #tpu.memory_space<vmem>>, vector<1x1xf32>
    %14 = vector.broadcast %13 : vector<1x1xf32> to vector<1x128xf32>
    %15 = arith.addf %12, %14 : vector<1x128xf32>
    %c0_11 = arith.constant 0 : index
    %c0_12 = arith.constant 0 : index
    %16 = vector.load %arg6[%c0_11, %c0_12] : memref<1x128xf32, #tpu.memory_space<vmem>>, vector<1x128xf32>
    tpu.vector_store %arg6[%c0_11, %c0_12], %15 {strides = array<i32>} : memref<1x128xf32, #tpu.memory_space<vmem>>, vector<1x128xf32>,
    return
  }
  func.func @transform_0(%arg0: i32) -> (i32, i32) {
    %c0_i32 = arith.constant 0 : i32
    %c0_i32_0 = arith.constant 0 : i32
    return %c0_i32, %arg0 : i32, i32
  }
  func.func @transform_1(%arg0: i32) -> (i32, i32) {
    %c0_i32 = arith.constant 0 : i32
    %c0_i32_0 = arith.constant 0 : i32
    %c0_i32_1 = arith.constant 0 : i32
    return %c0_i32, %c0_i32_0 : i32, i32
  }
  func.func @transform_2(%arg0: i32) -> (i32, i32) {
    %c0_i32 = arith.constant 0 : i32
    %c0_i32_0 = arith.constant 0 : i32
    %c0_i32_1 = arith.constant 0 : i32
    return %c0_i32, %c0_i32_0 : i32, i32
  }
  func.func @transform_3(%arg0: i32) -> (i32, i32) {
    %c0_i32 = arith.constant 0 : i32
    %c0_i32_0 = arith.constant 0 : i32
    %c0_i32_1 = arith.constant 0 : i32
    return %c0_i32, %c0_i32_0 : i32, i32
  }
  func.func @transform_4(%arg0: i32) -> (i32, i32) {
    %c0_i32 = arith.constant 0 : i32
    %c0_i32_0 = arith.constant 0 : i32
    %c0_i32_1 = arith.constant 0 : i32
    return %c0_i32, %c0_i32_0 : i32, i32
  }
  func.func @transform_5(%arg0: i32) -> (i32, i32) {
    %c0_i32 = arith.constant 0 : i32
    %c0_i32_0 = arith.constant 0 : i32
    return %c0_i32, %arg0 : i32, i32
  }
}

</mosaic_0001>

<bundles_post_ra>
// kernel: tpu_custom_call.1
= control target key start
LH: loop header
LB: loop body
LE: loop exit
PB: predicated region body
PF: predicated region fallthrough
CT: control target
= control target key end

     0   :  { %s625_s0 = inlined_call_operand.vmem [shape: f32[6,256], index: 0, kind: input, shape index: {}]   ;;  %s626_s1 = inlined_call_operand.vmem [shape: f32[16,6], index: 1, kind: input, shape index: {}]   ;;  %s627_s2 = inlined_call_operand.vmem [shape: f32[16,1], index: 2, kind: input, shape index: {}]   ;;  %s628_s3 = inlined_call_operand.vmem [shape: f32[16,1], index: 3, kind: input, shape index: {}]   ;;  %s629_s4 = inlined_call_operand.<no memory space> [shape: f32[1,1], index: 4, kind: input, shape index: {}]   ;;  %s630_s5 = inlined_call_operand.hbm [shape: f32[1,256], index: 5, kind: output, shape index: {}]  }
   0x1   :  { %v10_v0 = vstv %s629_s4 }
   0x2   :  { %11 = vst [vmem:[#allocation2] sm:$0x1] %v10_v0 }
   0x3   :  { %12 = vsyncpa [#allocation4], 0 }
   0x4   :  { %14 = vsyncpa [#allocation4 + $0x1], 0  ;;  %s522_s20 = smov 0   ;;  %s524_s21 = smov 0  }
   0x5   :  { %s526_s22 = smov 0   ;;  %s528_s23 = smov 0  }
   0x6 LB: > { %s543_s4 = sadd.s32 4294967295, %s486_s23   ;;  %s370_s24 = sadd.s32 4294967294, %s486_s23   ;;  %s486_s23 = sphi %s528_s23, %s636_s23   ;;  %s482_s22 = sphi %s526_s22, %s635_s22   ;;  %s478_s21 = sphi %s524_s21, %s634_s21   ;;  %s474_s20 = sphi %s522_s20, %s633_s20  }
   0x7   : > { %s547_s25 = sadd.s32 1, %s486_s23   ;;  %s137_s26 = sadd.s32 1, %s482_s22 }
   0x8   : > { %s134_s27 = ssub.s32 %s486_s23, %s547_s25  ;;  %p147_p0 = scmp.ne.s32.totalorder %s482_s22, %s478_s21 }
   0x9   : > { %p135_p1 = scmp.eq.s32.totalorder %s134_s27, 0  ;;  %p148_p2 = scmp.eq.s32.totalorder %s543_s4, 1 }
   0xa   : > { %p153_p3 = scmp.ne.s32.totalorder %s478_s21, %s474_s20  ;;  %p154_p4 = scmp.eq.s32.totalorder %s370_s24, 1 }
   0xb   : > { %s558_s28 = scalar_select %p135_p1, %s482_s22, %s137_s26  }
   0xc   : > { %p560_p5 = por %p148_p2, %p147_p0  ;;  %p564_p6 = por %p154_p4, %p153_p3 }
   0xd   : > { %p373_p7 = scmp.ge.s32.totalorder %s486_s23, 1  ;;  %p191_p8 = scmp.lt.s32.totalorder %s486_s23, 3 }
   0xf   : > { %p192_p9 = pnand %p373_p7, %p191_p8 }
  0x10   : > { %p217_p10 = scmp.lt.s32.totalorder (!%p192_p9), %s543_s4, 1  ;;  %s215_s6 = sand.u32 (!%p192_p9), 1, %s478_s21  }
  0x11   : > { %195 = sbr.rel (%p192_p9) target bundleno = 179 (0xb3), region = 40  ;;  %s311_s9 = scalar_lea.hbm (!%p192_p9), %s630_s5, %s543_s4 }
  0x12   : > { %s315_s12 = sshll.u32 (!%p192_p9), %s311_s9, 4  ;;  %s303_s13 = scalar_lea.sflag (!%p192_p9), [#allocation4], %s215_s6  ;;  %s316_s12 = int_to_ptr.hbm [resolvable:$true] %s315_s12 }
  0x13   : > { %s444_s17 = scalar_lea.hbm (!%p192_p9), %s630_s5, 2 }
  0x16   : > { %v224_v1 = vld [vmem:[%s627_s2] sm:$0xff]  ;;  %v488_v3 = vmov 0   ;;  %s218_s10 = scalar_select %p217_p10, %s543_s4, 1  ;;  %vm243_vm0 = vcmask 1045504   ;;  %vm236_vm1 = vcmask 48128   ;;  %v222_v6 = vld [vmem:[%s626_s1 + $0x8] sm:$0xff] }
  0x17   : > { %v272_v2 = vld [vmem:[%s628_s3] sm:$0xff]  ;;  %421 = vset.pattern.permute.xlu0 %v488_v3  ;;  %422 = vset.pattern.permute.xlu1 %v488_v3  ;;  %v225_v8 = vld [vmem:[%s627_s2 + $0x8] sm:$0xff] }
  0x18   : > { %228 = vperm.xlu0 %421, %v224_v1   ;;  %276 = vperm.xlu1 %422, %v272_v2   ;;  %v293_v4 = vld [vmem:[#allocation2] sm:$0x1]  ;;  %s374_s11 = sshll.u32 %s218_s10, 3  ;;  %v273_v9 = vld [vmem:[%s628_s3 + $0x8] sm:$0xff]  ;;  %s216_s10 = scalar_lea.vmem [#allocation3], %s215_s6 }
  0x19   : > { %423 = vset.pattern.permute.xlu2 %v488_v3  ;;  %s220_s14 = scalar_lea.vmem %s625_s0, %s374_s11  ;;  %v221_v5 = vld [vmem:[%s626_s1] sm:$0xff]  ;;  %s313_s11 = sshll.u32 %s216_s10, 4  ;;  %s314_s11 = int_to_ptr.vmem [resolvable:$true] %s313_s11 }
  0x1a   : > { %296 = vperm.xlu2 %423, %v293_v4   ;;  %v223_v7 = vld [vmem:[%s220_s14] sm:$0x3f]  ;;  %s438_s14 = sshra.s32 %s316_s12, 4  ;;  %s439_s14 = int_to_ptr.hbm [resolvable:$true] %s438_s14 }
  0x1b   : > { %375 = vmatpush.msk.msra.mxu0 %vm243_vm0, %v223_v7  ;;  %380 = vmatpush.msk.msra.mxu1 %vm243_vm0, %v223_v7  ;;  %s440_s15 = scalar_lea.hbm %s439_s14, 1  ;;  %p445_p0 = scmp.lt.s32.totalorder %s439_s14, %s630_s5 }
  0x1c   : > { %376 = vmatmul.msk.f32.vlgmr.msra.gmra.mxu0 %vm236_vm1, %v221_v5  ;;  %377 = vmatmul.msk.f32.vlgmr.msra.gmra.mxu1 %vm236_vm1, %v222_v6  ;;  %p441_p11 = scmp.ne.s32.totalorder %s439_s14, %s440_s15  ;;  %p446_p1 = scmp.lt.s32.totalorder %s444_s17, %s440_s15 }
  0x1e   : > { %p442_p12 = pnand %p441_p11, %p560_p5  ;;  %p447_p2 = por %p446_p1, %p445_p0 }
  0x20   : > { %233 = vperm.xlu0 %421, %v225_v8   ;;  %281 = vperm.xlu1 %422, %v273_v9   ;;  %p443_p13 = pneg %p442_p12 }
  0x22   : > { %p448_p3 = pnand %p447_p2, %p443_p13 }
  0x74   : > { %v297_v26 = vpop.permute.xlu2 %296 }
  0x75   : > { %v299_v29 = vperm.slane %v297_v26, 0 }
  0x8a   : > { %v229_v10 = vpop.permute.xlu0 %228  ;;  %v277_v11 = vpop.permute.xlu1 %276 }
  0x92   : > { %v234_v12 = vpop.permute.xlu0 %233  ;;  %v282_v19 = vpop.permute.xlu1 %281 }
  0x99   : > { %v264_v13 = vpop.f32.mrf.mxu0  ;;  %v267_v14 = vpop.f32.mrf.mxu1 }
  0x9a   : > { %v265_v15 = vadd.f32 %v264_v13, %v229_v10  ;;  %v268_v16 = vadd.f32 %v267_v14, %v234_v12 }
  0x9c   : > { %v270_v17 = vmax.f32 %v265_v15, 0.0  ;;  %v271_v18 = vmax.f32 %v268_v16, 0.0 }
  0x9e   : > { %v284_v20 = vmul.f32 %v277_v11, %v270_v17  ;;  %v285_v21 = vmul.f32 %v282_v19, %v271_v18 }
  0xa0   : > { %v286_v22 = vadd.f32 %v285_v21, %v284_v20 }
  0xa2   : > { %v287_v23 = vrot.slane %v286_v22, 4 }
  0xa4   : > { %v288_v24 = vadd.f32 %v287_v23, %v286_v22 }
  0xa6   : > { %v289_v25 = vrot.slane %v288_v24, 2 }
  0xa8   : > { %v290_v27 = vadd.f32 %v289_v25, %v288_v24 }
  0xaa   : > { %v291_v28 = vrot.slane %v290_v27, 1 }
  0xac   : > { %v292_v30 = vadd.f32 %v291_v28, %v290_v27 }
  0xae   : > { %v300_v31 = vadd.f32 %v299_v29, %v292_v30 }
  0xb0   : > { %301 = vst [vmem:[%s216_s10] sm:$0x1] %v300_v31 }
  0xb1   : > { %451 = shalt.err (!%p448_p3)
}
  0xb2   : > { %381 = dma.vmem_to_hbm [thread:$0]  (%p560_p5), %s314_s11, 16, %s316_s12, %s303_s13  }
  0xb3 PF: > { %p387_p4 = scmp.ge.s32.totalorder %s486_s23, 2  ;;  %s327_s24 = sand.u32 1, %s474_s20  }
  0xb4   : > { %s328_s26 = scalar_lea.sflag [#allocation4], %s327_s24 }
  0xb5   : > { %p384_p7 = pnand %p387_p4, %p564_p6 }
  0xb7   : > { %p385_p8 = pneg %p384_p7 }
  0xb9   : > { %469 = dma.done.wait (%p385_p8), %s328_s26, 16  }
  0xba   : > { %471 = vsyncadd (%p385_p8), %s328_s26, 4294967280  ;;  %p17_p9 = scmp.ge.s32.totalorder %s547_s25, 4   ;;  %s633_s20 = smov %s478_s21 }
  0xbb   : > { %s634_s21 = smov %s482_s22  ;;  %s635_s22 = smov %s558_s28 }
  0xbc   : > { %s636_s23 = smov %s547_s25  ;;  %19 = sbr.rel (!%p17_p9) target bundleno = 6 (0x6), region = 75 }
  0xc1   :  { %333 = vsyncpa [#allocation4], 1 }
  0xc2   :  { %335 = vsyncpa [#allocation4 + $0x1], 1 }

</bundles_post_ra>
